<compile_context>
chip_gen: v7x
topology: tpu7x:2x2x1
jax: 0.10.0
libtpu: 0.0.40
codegen_flags: <defaults>
</compile_context>

<pallas_src>
import jax
import jax.numpy as jnp
from jax.experimental import pallas as pl
from jax.experimental.pallas import tpu as pltpu

LN_EPS = 1e-12


def _mlm_head_kernel(
    x_ref,          # (N, H)  flattened hidden states, N = B*S
    wd_ref,         # (H, H)  dense weight, pre-transposed: y = x @ W + b
    bd_ref,         # (1, H)  dense bias
    gamma_ref,      # (1, H)  LayerNorm gamma
    beta_ref,       # (1, H)  LayerNorm beta
    wdec_ref,       # (H, V)  decoder weight, pre-transposed
    bias_ref,       # (1, V)  output bias (separate nn.Parameter in PyTorch)
    out_ref,        # (N, V)
):
    x = x_ref[...]

    # --- BertPredictionHeadTransform: dense ---------------------------------
    h = jnp.dot(x, wd_ref[...], preferred_element_type=jnp.float32) + bd_ref[...]
    # TODO(synk): transform_act_fn (gelu) is defined but never applied in the
    # PyTorch forward, so it is intentionally not applied here.

    # --- BertLayerNorm (biased variance, eps = 1e-12) ------------------------
    u = jnp.mean(h, axis=-1, keepdims=True)
    d = h - u
    s = jnp.mean(d * d, axis=-1, keepdims=True)
    normed = d * jax.lax.rsqrt(s + LN_EPS)          # rsqrt -> EUP slot (free-ish)
    h = gamma_ref[...] * normed + beta_ref[...]

    # --- decoder (no bias) + separate bias -----------------------------------
    out_ref[...] = (
        jnp.dot(h, wdec_ref[...], preferred_element_type=jnp.float32)
        + bias_ref[...]
    )


def masked_word_predictions(hidden_states, params):
    """hidden_states: (B, S, H) float32. Returns logits (B, S, V) float32."""
    B, S, H = hidden_states.shape
    V = params["decoder_w"].shape[1]

    # Collapse batch/seq so the whole problem is a single gridless invocation.
    x_flat = hidden_states.reshape(B * S, H).astype(jnp.float32)

    vmem_spec = pl.BlockSpec(memory_space=pltpu.MemorySpace.VMEM)

    out_flat = pl.pallas_call(
        _mlm_head_kernel,
        out_shape=jax.ShapeDtypeStruct((B * S, V), jnp.float32),
        in_specs=[vmem_spec] * 7,
        out_specs=vmem_spec,
    )(
        x_flat,
        params["dense_w"], params["dense_b"],
        params["gamma"], params["beta"],
        params["decoder_w"], params["decoder_bias"],
    )
    return out_flat.reshape(B, S, V)


def _reference(hidden_states, params):
    """Pure-JAX reference mirroring the PyTorch forward exactly."""
    h = hidden_states @ params["dense_w"] + params["dense_b"][0]
    u = jnp.mean(h, axis=-1, keepdims=True)
    s = jnp.mean((h - u) ** 2, axis=-1, keepdims=True)
    h = (h - u) / jnp.sqrt(s + LN_EPS)
    h = params["gamma"][0] * h + params["beta"][0]
    return h @ params["decoder_w"] + params["decoder_bias"][0]


if __name__ == "__main__":
    # Small demo shapes: batch=2, seq=8, hidden=32, vocab=128 (lane-dense output).
    B, S, H, V = 2, 8, 32, 128

    key = jax.random.PRNGKey(0)
    keys = jax.random.split(key, 5)

    params = {
        # PyTorch nn.Linear stores weight as (out, in); we keep pre-transposed
        # (in, out) layouts so the kernel computes y = x @ W + b directly.
        "dense_w": (0.02 * jax.random.normal(keys[0], (H, H))).astype(jnp.float32),
        "dense_b": (0.02 * jax.random.normal(keys[1], (1, H))).astype(jnp.float32),
        "gamma": jnp.ones((1, H), jnp.float32),
        "beta": jnp.zeros((1, H), jnp.float32),
        "decoder_w": (0.02 * jax.random.normal(keys[2], (H, V))).astype(jnp.float32),
        "decoder_bias": (0.02 * jax.random.normal(keys[3], (1, V))).astype(jnp.float32),
    }

    x = jax.random.normal(keys[4], (B, S, H), dtype=jnp.float32)

    out = masked_word_predictions(x, params)
    out = jax.block_until_ready(out)

    ref = _reference(x, params)
    assert out.shape == (B, S, V)
    assert jnp.allclose(out, ref, atol=1e-4, rtol=1e-4), (
        f"max abs err = {jnp.max(jnp.abs(out - ref))}")

    print("KERNEL_OK")
</pallas_src>

<mosaic_0001>
module attributes {stable_mosaic.version = 11 : i64} {
  func.func @_mlm_head_kernel(%arg0: memref<16x32xf32, #tpu.memory_space<vmem>>, %arg1: memref<32x32xf32, #tpu.memory_space<vmem>>, %arg2: memref<1x32xf32, #tpu.memory_space<vmem>>, %arg3: memref<1x32xf32, #tpu.memory_space<vmem>>, %arg4: memref<1x32xf32, #tpu.memory_space<vmem>>, %arg5: memref<32x128xf32, #tpu.memory_space<vmem>>, %arg6: memref<1x128xf32, #tpu.memory_space<vmem>>, %arg7: memref<16x128xf32, #tpu.memory_space<vmem>>) attributes {dimension_semantics = [], scalar_prefetch = 0 : i64, scratch_operands = 0 : i64, tpu.core_type = #tpu.core_type<tc>} {
    %c0 = arith.constant 0 : index
    %c0_0 = arith.constant 0 : index
    %0 = vector.load %arg0[%c0, %c0_0] : memref<16x32xf32, #tpu.memory_space<vmem>>, vector<16x32xf32>
    %c0_1 = arith.constant 0 : index
    %c0_2 = arith.constant 0 : index
    %1 = vector.load %arg1[%c0_1, %c0_2] : memref<32x32xf32, #tpu.memory_space<vmem>>, vector<32x32xf32>
    %cst = arith.constant dense<0.000000e+00> : vector<16x32xf32>
    %2 = tpu.matmul %0, %1, %cst {dimension_numbers = #tpu.dot_dimension_numbers<[1], [0], [0], [1], [0, 0, 1, 1], [], []>} : vector<16x32xf32>, vector<32x32xf32>, vector<16x32xf32> -> vector<16x32xf32>
    %c0_3 = arith.constant 0 : index
    %c0_4 = arith.constant 0 : index
    %3 = vector.load %arg2[%c0_3, %c0_4] : memref<1x32xf32, #tpu.memory_space<vmem>>, vector<1x32xf32>
    %4 = vector.broadcast %3 : vector<1x32xf32> to vector<16x32xf32>
    %5 = arith.addf %2, %4 : vector<16x32xf32>
    %cst_5 = arith.constant dense<0.000000e+00> : vector<16xf32>
    %6 = vector.multi_reduction <add>, %5, %cst_5 [1] : vector<16x32xf32> to vector<16xf32>
    %7 = vector.shape_cast %6 : vector<16xf32> to vector<16x1xf32>
    %cst_6 = arith.constant 3.200000e+01 : f32
    %8 = vector.broadcast %cst_6 : f32 to vector<16x1xf32>
    %9 = arith.divf %7, %8 : vector<16x1xf32>
    %10 = vector.broadcast %9 : vector<16x1xf32> to vector<16x32xf32>
    %11 = arith.subf %5, %10 : vector<16x32xf32>
    %12 = arith.mulf %11, %11 : vector<16x32xf32>
    %cst_7 = arith.constant dense<0.000000e+00> : vector<16xf32>
    %13 = vector.multi_reduction <add>, %12, %cst_7 [1] : vector<16x32xf32> to vector<16xf32>
    %14 = vector.shape_cast %13 : vector<16xf32> to vector<16x1xf32>
    %cst_8 = arith.constant 3.200000e+01 : f32
    %15 = vector.broadcast %cst_8 : f32 to vector<16x1xf32>
    %16 = arith.divf %14, %15 : vector<16x1xf32>
    %cst_9 = arith.constant 9.99999996E-13 : f32
    %17 = vector.broadcast %cst_9 : f32 to vector<16x1xf32>
    %18 = arith.addf %16, %17 : vector<16x1xf32>
    %19 = math.rsqrt %18 : vector<16x1xf32>
    %20 = vector.broadcast %19 : vector<16x1xf32> to vector<16x32xf32>
    %21 = arith.mulf %11, %20 : vector<16x32xf32>
    %c0_10 = arith.constant 0 : index
    %c0_11 = arith.constant 0 : index
    %22 = vector.load %arg3[%c0_10, %c0_11] : memref<1x32xf32, #tpu.memory_space<vmem>>, vector<1x32xf32>
    %23 = vector.broadcast %22 : vector<1x32xf32> to vector<16x32xf32>
    %24 = arith.mulf %23, %21 : vector<16x32xf32>
    %c0_12 = arith.constant 0 : index
    %c0_13 = arith.constant 0 : index
    %25 = vector.load %arg4[%c0_12, %c0_13] : memref<1x32xf32, #tpu.memory_space<vmem>>, vector<1x32xf32>
    %26 = vector.broadcast %25 : vector<1x32xf32> to vector<16x32xf32>
    %27 = arith.addf %24, %26 : vector<16x32xf32>
    %c0_14 = arith.constant 0 : index
    %c0_15 = arith.constant 0 : index
    %28 = vector.load %arg5[%c0_14, %c0_15] : memref<32x128xf32, #tpu.memory_space<vmem>>, vector<32x128xf32>
    %cst_16 = arith.constant dense<0.000000e+00> : vector<16x128xf32>
    %29 = tpu.matmul %27, %28, %cst_16 {dimension_numbers = #tpu.dot_dimension_numbers<[1], [0], [0], [1], [0, 0, 1, 1], [], []>} : vector<16x32xf32>, vector<32x128xf32>, vector<16x128xf32> -> vector<16x128xf32>
    %c0_17 = arith.constant 0 : index
    %c0_18 = arith.constant 0 : index
    %30 = vector.load %arg6[%c0_17, %c0_18] : memref<1x128xf32, #tpu.memory_space<vmem>>, vector<1x128xf32>
    %31 = vector.broadcast %30 : vector<1x128xf32> to vector<16x128xf32>
    %32 = arith.addf %29, %31 : vector<16x128xf32>
    %c0_19 = arith.constant 0 : index
    %c0_20 = arith.constant 0 : index
    %33 = vector.load %arg7[%c0_19, %c0_20] : memref<16x128xf32, #tpu.memory_space<vmem>>, vector<16x128xf32>
    tpu.vector_store %arg7[%c0_19, %c0_20], %32 {strides = array<i32>} : memref<16x128xf32, #tpu.memory_space<vmem>>, vector<16x128xf32>,
    return
  }
}

</mosaic_0001>

<bundles_post_ra>
// kernel: tpu_custom_call.1
= control target key start
LH: loop header
LB: loop body
LE: loop exit
PB: predicated region body
PF: predicated region fallthrough
CT: control target
= control target key end

     0   :  { %12 = vsyncpa [#allocation3], 0  ;;  %s615_s0 = inlined_call_operand.hbm [shape: f32[16,32], index: 0, kind: input, shape index: {}]   ;;  %s616_s1 = inlined_call_operand.hbm [shape: f32[32,32], index: 1, kind: input, shape index: {}]   ;;  %s617_s2 = inlined_call_operand.vmem [shape: f32[1,32], index: 2, kind: input, shape index: {}]   ;;  %s618_s3 = inlined_call_operand.vmem [shape: f32[1,32], index: 3, kind: input, shape index: {}]   ;;  %s619_s4 = inlined_call_operand.vmem [shape: f32[1,32], index: 4, kind: input, shape index: {}]   ;;  %s620_s5 = inlined_call_operand.hbm [shape: f32[32,128], index: 5, kind: input, shape index: {}]   ;;  %s621_s6 = inlined_call_operand.vmem [shape: f32[1,128], index: 6, kind: input, shape index: {}]   ;;  %s622_s7 = inlined_call_operand.hbm [shape: f32[16,128], index: 7, kind: output, shape index: {}]  }
   0x1   :  { %13 = vsyncpa [#allocation6], 0 }
   0x2   :  { %14 = vsyncpa [#allocation4], 0  ;;  %s482_s24 = smov [#allocation5]   ;;  %s483_s26 = smov [#allocation2]  }
   0x3   :  { %s32_s25 = sshll.u32 %s482_s24, 4  ;;  %s20_s27 = sshll.u32 %s483_s26, 4  ;;  %s33_s25 = int_to_ptr.vmem [resolvable:$true] %s32_s25  ;;  %s528_s27 = int_to_ptr.vmem [resolvable:$true] %s20_s27 }
   0x4   :  { %s388_s30 = scalar_lea.hbm %s616_s1, 512 }
   0x5   :  { %p389_p0 = scmp.ne.s32.totalorder %s616_s1, %s388_s30  ;;  %p392_p1 = scmp.lt.u32.totalorder %s388_s30, %s616_s1 }
   0x7   :  { %p394_p2 = pnand %p392_p1, %p389_p0 }
   0x9   :  { %397 = shalt.err (!%p394_p2)
}
   0xa   :  { %s398_s12 = scalar_lea.vmem %s33_s25, 512  ;;  %p403_p4 = scmp.lt.s32.totalorder %s33_s25, %s33_s25 }
   0xb   :  { %p399_p3 = scmp.ne.s32.totalorder %s33_s25, %s398_s12  ;;  %p404_p5 = scmp.lt.s32.totalorder %s398_s12, %s398_s12 }
   0xd   :  { %p405_p6 = por %p404_p5, %p403_p4 }
   0xf   :  { %p406_p7 = pnand %p405_p6, %p399_p3 }
  0x11   :  { %409 = shalt.err (!%p406_p7)
}
  0x12   :  { %s484_s13 = smov 128   ;;  %s485_s14 = smov 8  }
  0x13   :  { %38 = dma.hbm_to_vmem [thread:$0]  %s616_s1, 512, %s33_s25, [#allocation6], %s484_s13, %s484_s13, %s485_s14  }
  0x14   :  { %s410_s19 = scalar_lea.hbm %s615_s0, 256 }
  0x15   :  { %p411_p8 = scmp.ne.s32.totalorder %s615_s0, %s410_s19  ;;  %p414_p9 = scmp.lt.u32.totalorder %s410_s19, %s615_s0 }
  0x17   :  { %p416_p10 = pnand %p414_p9, %p411_p8 }
  0x19   :  { %419 = shalt.err (!%p416_p10)
}
  0x1a   :  { %s420_s24 = scalar_lea.vmem %s528_s27, 256  ;;  %p425_p12 = scmp.lt.s32.totalorder %s528_s27, %s528_s27 }
  0x1b   :  { %p421_p11 = scmp.ne.s32.totalorder %s528_s27, %s420_s24  ;;  %p426_p13 = scmp.lt.s32.totalorder %s420_s24, %s420_s24 }
  0x1d   :  { %p427_p0 = por %p426_p13, %p425_p12 }
  0x1f   :  { %p428_p1 = pnand %p427_p0, %p421_p11 }
  0x21   :  { %431 = shalt.err (!%p428_p1)
}
  0x22   :  { %26 = dma.hbm_to_vmem [thread:$0]  %s615_s0, 256, %s528_s27, [#allocation3], %s484_s13, %s484_s13, %s485_s14  }
  0x23   :  { %s486_s26 = smov [#allocation7]   ;;  %s432_s8 = scalar_lea.hbm %s620_s5, 512 }
  0x24   :  { %s50_s28 = sshll.u32 %s486_s26, 4  ;;  %p433_p2 = scmp.ne.s32.totalorder %s620_s5, %s432_s8  ;;  %s51_s28 = int_to_ptr.vmem [resolvable:$true] %s50_s28 }
  0x25   :  { %p436_p3 = scmp.lt.u32.totalorder %s432_s8, %s620_s5 }
  0x27   :  { %p438_p4 = pnand %p436_p3, %p433_p2 }
  0x29   :  { %441 = shalt.err (!%p438_p4)
}
  0x2a   :  { %s442_s15 = scalar_lea.vmem %s51_s28, 512  ;;  %p447_p6 = scmp.lt.s32.totalorder %s51_s28, %s51_s28 }
  0x2b   :  { %p443_p5 = scmp.ne.s32.totalorder %s51_s28, %s442_s15  ;;  %p448_p7 = scmp.lt.s32.totalorder %s442_s15, %s442_s15 }
  0x2d   :  { %p449_p8 = por %p448_p7, %p447_p6 }
  0x2f   :  { %p450_p9 = pnand %p449_p8, %p443_p5 }
  0x31   :  { %453 = shalt.err (!%p450_p9)
}
  0x32   :  { %56 = dma.hbm_to_vmem [thread:$0]  %s620_s5, 512, %s51_s28, [#allocation6], %s484_s13, %s484_s13, %s485_s14  }
  0x33   :  { %476 = dma.done.wait [#allocation3], 256  }
  0x34   :  { %477 = vsyncadd [#allocation3], 4294967040 }
  0x35   :  { %478 = dma.done.wait [#allocation6], 1024  }
  0x36   :  { %479 = vsyncadd [#allocation6], 4294966272  ;;  %vm81_vm0 = vcmask 261120   ;;  %v70_v0 = vld [vmem:[#allocation5] sm:$0xff]  ;;  %v71_v1 = vld [vmem:[#allocation5 + $0x8] sm:$0xff] }
  0x37   :  { %v72_v2 = vld [vmem:[#allocation5 + $0x10] sm:$0xff]  ;;  %v362_v3 = vpack.c.bf16 %v71_v1, %v70_v0  ;;  %v73_v4 = vld [vmem:[#allocation5 + $0x18] sm:$0xff]  ;;  %v208_v25 = vld [vmem:[#allocation7] sm:$0xff] }
  0x38   :  { %v68_v5 = vld [vmem:[#allocation2] sm:$0xff]  ;;  %v366_v6 = vpack.c.bf16 %v73_v4, %v72_v2  ;;  %v69_v7 = vld [vmem:[#allocation2 + $0x8] sm:$0xff]  ;;  %v209_v26 = vld [vmem:[#allocation7 + $0x8] sm:$0xff] }
  0x39   :  { %348 = vmatprep.mubr.msk.f32.mxu0 %vm81_vm0, %v68_v5  ;;  %363 = vmatprep.subr.bf16.mxu0 %v362_v3  ;;  %v320_v8 = vld [vmem:[%s617_s2] ss:$0 sm:$0xff]  ;;  %v370_v28 = vpack.c.bf16 %v209_v26, %v208_v25  ;;  %v211_v29 = vld [vmem:[#allocation7 + $0x18] sm:$0xff] }
  0x3a   :  { %365 = vmatpush3.bf16.msra.mxu0 %v362_v3  ;;  %v210_v27 = vld [vmem:[#allocation7 + $0x10] sm:$0xff] }
  0x3b   :  { %367 = vmatprep.subr.bf16.mxu0 %v366_v6  ;;  %v374_v30 = vpack.c.bf16 %v211_v29, %v210_v27  ;;  %371 = vmatprep.subr.bf16.mxu1 %v370_v28  ;;  %v323_v38 = vld [vmem:[%s618_s3] ss:$0 sm:$0xff]  ;;  %s487_s3 = smov [#allocation8]  }
  0x3c   :  { %373 = vmatpush3.bf16.msra.mxu1 %v370_v28  ;;  %v324_v40 = vld [vmem:[%s619_s4] ss:$0 sm:$0xff]  ;;  %s307_s22 = sshll.u32 %s487_s3, 4  ;;  %s308_s22 = int_to_ptr.vmem [resolvable:$true] %s307_s22 }
  0x3d   :  { %375 = vmatprep.subr.bf16.mxu1 %v374_v30  ;;  %v325_v47 = vld [vmem:[%s621_s6] ss:$0 sm:$0xff]  ;;  %s454_s4 = scalar_lea.vmem %s308_s22, 256  ;;  %p459_p11 = scmp.lt.s32.totalorder %s308_s22, %s308_s22 }
  0x3e   :  { %369 = vmatpush3.bf16.msra.mxu0 %v366_v6  ;;  %p455_p10 = scmp.ne.s32.totalorder %s308_s22, %s454_s4  ;;  %p460_p12 = scmp.lt.s32.totalorder %s454_s4, %s454_s4 }
  0x40   :  { %377 = vmatpush3.bf16.msra.mxu1 %v374_v30  ;;  %p461_p13 = por %p460_p12, %p459_p11 }
  0x41   :  { %349 = vmatmul.mubr.msk.f32.vlgmr.msra.gmra.mrb[0].mxu0 %vm81_vm0, %v69_v7 }
  0x42   :  { %p462_p0 = pnand %p461_p13, %p455_p10 }
 0x114   :  { %v350_v9 = vpop.f32.mrb[0].mxu0 }
 0x115   :  { %v154_v10 = vpop.f32.mrb[1].mxu0  ;;  %v160_v12 = vadd.f32 %v350_v9, %v320_v8 }
 0x116   :  { %v155_v11 = vadd.f32 %v320_v8, %v154_v10 }
 0x117   :  { %v166_v14 = vsel %vm81_vm0, %v160_v12, 0.0 }
 0x118   :  { %v163_v13 = vsel %vm81_vm0, %v155_v11, 0.0 }
 0x119   :  { %164 = vadd.xlane.f32.xlu0 %v163_v13 }
 0x11d   :  { %167 = vadd.xlane.f32.xlu0 %v166_v14 }
 0x1a6   :  { %v165_v15 = vpop.xlane.xlu0 %164 }
 0x1a7   :  { %v170_v16 = vmul.f32 0.03125, %v165_v15 }
 0x1a9   :  { %v172_v17 = vsub.f32 %v155_v11, %v170_v16 }
 0x1aa   :  { %v168_v18 = vpop.xlane.xlu0 %167 }
 0x1ab   :  { %v171_v19 = vmul.f32 0.03125, %v168_v18  ;;  %v174_v20 = vmul.f32 %v172_v17, %v172_v17 }
 0x1ad   :  { %v173_v21 = vsub.f32 %v160_v12, %v171_v19  ;;  %v176_v22 = vsel %vm81_vm0, %v174_v20, 0.0 }
 0x1ae   :  { %177 = vadd.xlane.f32.xlu1 %v176_v22 }
 0x1af   :  { %v175_v23 = vmul.f32 %v173_v21, %v173_v21 }
 0x1b1   :  { %v179_v24 = vsel %vm81_vm0, %v175_v23, 0.0 }
 0x1b2   :  { %180 = vadd.xlane.f32.xlu1 %v179_v24 }
 0x23b   :  { %v178_v31 = vpop.xlane.xlu1 %177 }
 0x23c   :  { %v182_v32 = vmul.f32 0.03125, %v178_v31 }
 0x23e   :  { %v184_v33 = vadd.f32 1e-12, %v182_v32 }
 0x23f   :  { %v181_v34 = vpop.xlane.xlu1 %180 }
 0x240   :  { %384 = vrsqrt.f32 %v184_v33  ;;  %v183_v35 = vmul.f32 0.03125, %v181_v34 }
 0x242   :  { %v185_v36 = vadd.f32 1e-12, %v183_v35 }
 0x244   :  { %386 = vrsqrt.f32 %v185_v36 }
 0x24a   :  { %v385_v37 = vpop.eup %384 }
 0x24b   :  { %v188_v39 = vmul.f32 %v385_v37, %v172_v17 }
 0x24d   :  { %v197_v41 = vmul.f32 %v323_v38, %v188_v39 }
 0x24e   :  { %v387_v42 = vpop.eup %386 }
 0x24f   :  { %v189_v43 = vmul.f32 %v387_v42, %v173_v21  ;;  %v206_v44 = vadd.f32 %v324_v40, %v197_v41 }
 0x251   :  { %v198_v45 = vmul.f32 %v323_v38, %v189_v43  ;;  %359 = vmatprep.mubr.msk.f32.mxu1 %vm81_vm0, %v206_v44 }
 0x253   :  { %v207_v46 = vadd.f32 %v324_v40, %v198_v45 }
 0x255   :  { %360 = vmatmul.mubr.msk.f32.vlgmr.msra.gmra.mrb[0].mxu1 %vm81_vm0, %v207_v46 }
 0x328   :  { %v361_v48 = vpop.f32.mrb[0].mxu1 }
 0x329   :  { %v297_v49 = vadd.f32 %v361_v48, %v325_v47  ;;  %v291_v50 = vpop.f32.mrb[1].mxu1 }
 0x32a   :  { %v292_v51 = vadd.f32 %v325_v47, %v291_v50 }
 0x32b   :  { %301 = vst [vmem:[#allocation8 + $0x8] sm:$0xff] %v297_v49 }
 0x32c   :  { %300 = vst [vmem:[#allocation8] sm:$0xff] %v292_v51 }
 0x32d   :  { %465 = shalt.err (!%p462_p0)
}
 0x32e   :  { %s466_s6 = scalar_lea.hbm %s622_s7, 256 }
 0x32f   :  { %p467_p1 = scmp.ne.s32.totalorder %s622_s7, %s466_s6  ;;  %p470_p2 = scmp.lt.u32.totalorder %s466_s6, %s622_s7 }
 0x331   :  { %p472_p3 = pnand %p470_p2, %p467_p1 }
 0x333   :  { %475 = shalt.err (!%p472_p3)
}
 0x334   :  { %313 = dma.vmem_to_hbm [thread:$0]  %s308_s22, 256, %s622_s7, [#allocation4], %s484_s13, %s484_s13, %s485_s14  }
 0x335   :  { %480 = dma.done.wait [#allocation4], 256  }
 0x336   :  { %481 = vsyncadd [#allocation4], 4294967040 }
 0x337   :  { %317 = vsyncpa [#allocation3], 1 }
 0x338   :  { %318 = vsyncpa [#allocation6], 1 }
 0x339   :  { %319 = vsyncpa [#allocation4], 1 }

</bundles_post_ra>
